<compile_context>
chip_gen: v7x
topology: tpu7x:2x2x1
jax: 0.10.0
libtpu: 0.0.40
codegen_flags: <defaults>
</compile_context>

<pallas_src>
import jax
import jax.numpy as jnp
from jax.experimental import pallas as pl
from jax.experimental.pallas import tpu as pltpu


def _outconv_kernel(x_ref, wt_ref, b_ref, o_ref):
    """1x1 conv as a VPU channel mix over a lane-major spatial tile.

    x_ref  : (C_in,  T)      activations; C_in on sublanes, spatial on lanes
    wt_ref : (C_in,  C_out)  transposed weights (tiny, VMEM resident)
    b_ref  : (C_out, 1)      bias
    o_ref  : (C_out, T)      output tile (lane-dense stores)
    """
    x = x_ref[...]
    wt = wt_ref[...]
    c_out = o_ref.shape[0]

    rows = []
    for co in range(c_out):  # unrolled: C_out is tiny (3)
        # (C_in, 1) weight column lane-broadcast against (C_in, T) activations
        # (VPU multiplies), then a sublane reduction over C_in (XLU).
        prod = wt[:, co:co + 1] * x
        rows.append(jnp.sum(prod, axis=0, keepdims=True))

    out = jnp.concatenate(rows, axis=0) + b_ref[...]   # bias fused, (C_out, T)
    o_ref[...] = out.astype(o_ref.dtype)


def _pick_tile_hw(hw, cap):
    """Largest multiple-of-128 divisor of hw that is <= cap (else hw itself)."""
    if hw % 128 != 0:
        return hw  # full-extent block along the spatial axis is always legal
    t = min(hw, cap)
    t -= t % 128
    while hw % t != 0:
        t -= 128
    return max(t, 128)


def outconv_pallas(x_nchw, weight, bias, *, tile_hw_cap=32768):
    """Forward of outconv: nn.Conv2d(in_ch, out_ch, kernel_size=1).

    x_nchw : (N, C_in, H, W)  float32
    weight : (C_out, C_in, 1, 1)
    bias   : (C_out,)
    returns: (N, C_out, H, W)
    """
    N, C_in, H, W = x_nchw.shape
    C_out = weight.shape[0]
    HW = H * W

    # Pure reshapes (views) -- no HBM transposes of the activations.
    x3d = x_nchw.reshape(N, C_in, HW)           # (N, C_in, HW)
    wt = weight.reshape(C_out, C_in).T          # (C_in, C_out), tiny
    b2d = bias.reshape(C_out, 1)                # (C_out, 1)

    tile_hw = _pick_tile_hw(HW, tile_hw_cap)
    grid = (N, HW // tile_hw)

    out3d = pl.pallas_call(
        _outconv_kernel,
        out_shape=jax.ShapeDtypeStruct((N, C_out, HW), x_nchw.dtype),
        grid_spec=pltpu.PrefetchScalarGridSpec(
            num_scalar_prefetch=0,
            grid=grid,
            in_specs=[
                # Activations: batch dim squeezed, C_in on sublanes, HW on lanes.
                pl.BlockSpec((None, C_in, tile_hw), lambda n, s: (n, 0, s)),
                # Weights / bias: full tiny arrays, VMEM resident (constant index).
                pl.BlockSpec((C_in, C_out), lambda n, s: (0, 0)),
                pl.BlockSpec((C_out, 1), lambda n, s: (0, 0)),
            ],
            out_specs=pl.BlockSpec((None, C_out, tile_hw), lambda n, s: (n, 0, s)),
        ),
        compiler_params=pltpu.CompilerParams(
            # Both grid axes are independent -> shardable across TCs (v7x).
            dimension_semantics=("parallel", "parallel"),
            # Explicit VMEM budget with headroom: safe on v5e/v6e (128 MiB)
            # and v7x (64 MiB physical); double-buffered tiles stay far below.
            vmem_limit_bytes=48 * 1024 * 1024,
        ),
    )(x3d, wt, b2d)

    return out3d.reshape(N, C_out, H, W)


if __name__ == "__main__":
    key = jax.random.PRNGKey(0)
    k_x, k_w, k_b = jax.random.split(key, 3)

    # Shapes of the Network's `outc` head: Conv2d(32, 3, kernel_size=1).
    N, C_in, C_out, H, W = 2, 32, 3, 16, 16
    x = jax.random.normal(k_x, (N, C_in, H, W), dtype=jnp.float32)
    weight = jax.random.normal(k_w, (C_out, C_in, 1, 1), dtype=jnp.float32) * 0.1
    bias = jax.random.normal(k_b, (C_out,), dtype=jnp.float32) * 0.1

    y = outconv_pallas(x, weight, bias)
    y = jax.block_until_ready(y)

    # Reference: plain-JAX 1x1 conv semantics check.
    y_ref = jnp.einsum("nchw,oc->nohw", x, weight.reshape(C_out, C_in)) \
            + bias.reshape(1, C_out, 1, 1)
    assert y.shape == (N, C_out, H, W)
    assert jnp.allclose(y, y_ref, atol=1e-5, rtol=1e-5)

    print("KERNEL_OK")
</pallas_src>

<mosaic_0001>
module attributes {stable_mosaic.version = 11 : i64} {
  func.func @_outconv_kernel(%arg0: i32, %arg1: i32, %arg2: memref<1x32x256xf32, #tpu.memory_space<vmem>>, %arg3: memref<32x3xf32, #tpu.memory_space<vmem>>, %arg4: memref<3x1xf32, #tpu.memory_space<vmem>>, %arg5: memref<1x3x256xf32, #tpu.memory_space<vmem>>) attributes {dimension_semantics = [#tpu.dimension_semantics<parallel>, #tpu.dimension_semantics<parallel>], iteration_bounds = array<i64: 2, 1>, scalar_prefetch = 0 : i64, scratch_operands = 0 : i64, tpu.core_type = #tpu.core_type<tc>, window_params = [{transform_indices = @transform_0, window_bounds = array<i64: 1, 32, 256>}, {pipeline_mode = #tpu.pipeline_mode<synchronous>, transform_indices = @transform_1, window_bounds = array<i64: 32, 3>}, {pipeline_mode = #tpu.pipeline_mode<synchronous>, transform_indices = @transform_2, window_bounds = array<i64: 3, 1>}, {transform_indices = @transform_3, window_bounds = array<i64: 1, 3, 256>}]} {
    %c0 = arith.constant 0 : index
    %c0_0 = arith.constant 0 : index
    %c0_1 = arith.constant 0 : index
    %0 = vector.load %arg2[%c0, %c0_0, %c0_1] : memref<1x32x256xf32, #tpu.memory_space<vmem>>, vector<1x32x256xf32>
    %1 = vector.shape_cast %0 : vector<1x32x256xf32> to vector<32x256xf32>
    %c0_2 = arith.constant 0 : index
    %c0_3 = arith.constant 0 : index
    %2 = vector.load %arg3[%c0_2, %c0_3] : memref<32x3xf32, #tpu.memory_space<vmem>>, vector<32x3xf32>
    %3 = vector.extract_strided_slice %2 {offsets = [0, 0], sizes = [32, 1], strides = [1, 1]} : vector<32x3xf32> to vector<32x1xf32>
    %4 = vector.broadcast %3 : vector<32x1xf32> to vector<32x256xf32>
    %5 = arith.mulf %4, %1 : vector<32x256xf32>
    %cst = arith.constant dense<0.000000e+00> : vector<256xf32>
    %6 = vector.multi_reduction <add>, %5, %cst [0] : vector<32x256xf32> to vector<256xf32>
    %7 = vector.shape_cast %6 : vector<256xf32> to vector<1x256xf32>
    %8 = vector.extract_strided_slice %2 {offsets = [0, 1], sizes = [32, 1], strides = [1, 1]} : vector<32x3xf32> to vector<32x1xf32>
    %9 = vector.broadcast %8 : vector<32x1xf32> to vector<32x256xf32>
    %10 = arith.mulf %9, %1 : vector<32x256xf32>
    %cst_4 = arith.constant dense<0.000000e+00> : vector<256xf32>
    %11 = vector.multi_reduction <add>, %10, %cst_4 [0] : vector<32x256xf32> to vector<256xf32>
    %12 = vector.shape_cast %11 : vector<256xf32> to vector<1x256xf32>
    %13 = vector.extract_strided_slice %2 {offsets = [0, 2], sizes = [32, 1], strides = [1, 1]} : vector<32x3xf32> to vector<32x1xf32>
    %14 = vector.broadcast %13 : vector<32x1xf32> to vector<32x256xf32>
    %15 = arith.mulf %14, %1 : vector<32x256xf32>
    %cst_5 = arith.constant dense<0.000000e+00> : vector<256xf32>
    %16 = vector.multi_reduction <add>, %15, %cst_5 [0] : vector<32x256xf32> to vector<256xf32>
    %17 = vector.shape_cast %16 : vector<256xf32> to vector<1x256xf32>
    %18 = tpu.concatenate %7, %12, %17 in 0 : vector<1x256xf32>, vector<1x256xf32>, vector<1x256xf32> -> vector<3x256xf32>
    %c0_6 = arith.constant 0 : index
    %c0_7 = arith.constant 0 : index
    %19 = vector.load %arg4[%c0_6, %c0_7] : memref<3x1xf32, #tpu.memory_space<vmem>>, vector<3x1xf32>
    %20 = vector.broadcast %19 : vector<3x1xf32> to vector<3x256xf32>
    %21 = arith.addf %18, %20 : vector<3x256xf32>
    %c0_8 = arith.constant 0 : index
    %c0_9 = arith.constant 0 : index
    %c0_10 = arith.constant 0 : index
    %22 = vector.load %arg5[%c0_8, %c0_9, %c0_10] : memref<1x3x256xf32, #tpu.memory_space<vmem>>, vector<1x3x256xf32>
    %23 = vector.shape_cast %22 : vector<1x3x256xf32> to vector<3x256xf32>
    %24 = vector.shape_cast %21 : vector<3x256xf32> to vector<1x3x256xf32>
    tpu.vector_store %arg5[%c0_8, %c0_9, %c0_10], %24 {strides = array<i32>} : memref<1x3x256xf32, #tpu.memory_space<vmem>>, vector<1x3x256xf32>,
    return
  }
  func.func @transform_0(%arg0: i32, %arg1: i32) -> (i32, i32, i32) {
    %c0_i32 = arith.constant 0 : i32
    %c0_i32_0 = arith.constant 0 : i32
    return %arg0, %c0_i32, %arg1 : i32, i32, i32
  }
  func.func @transform_1(%arg0: i32, %arg1: i32) -> (i32, i32) {
    %c0_i32 = arith.constant 0 : i32
    %c0_i32_0 = arith.constant 0 : i32
    %c0_i32_1 = arith.constant 0 : i32
    return %c0_i32, %c0_i32_0 : i32, i32
  }
  func.func @transform_2(%arg0: i32, %arg1: i32) -> (i32, i32) {
    %c0_i32 = arith.constant 0 : i32
    %c0_i32_0 = arith.constant 0 : i32
    %c0_i32_1 = arith.constant 0 : i32
    return %c0_i32, %c0_i32_0 : i32, i32
  }
  func.func @transform_3(%arg0: i32, %arg1: i32) -> (i32, i32, i32) {
    %c0_i32 = arith.constant 0 : i32
    %c0_i32_0 = arith.constant 0 : i32
    return %arg0, %c0_i32, %arg1 : i32, i32, i32
  }
}

</mosaic_0001>

<bundles_post_ra>
// kernel: tpu_custom_call.1
= control target key start
LH: loop header
LB: loop body
LE: loop exit
PB: predicated region body
PF: predicated region fallthrough
CT: control target
= control target key end

     0   :  { %8 = vsyncpa [#allocation3], 0  ;;  %s817_s0 = inlined_call_operand.hbm [shape: f32[2,32,256], index: 0, kind: input, shape index: {}]   ;;  %s818_s1 = inlined_call_operand.vmem [shape: f32[32,3], index: 1, kind: input, shape index: {}]   ;;  %s819_s2 = inlined_call_operand.vmem [shape: f32[3,1], index: 2, kind: input, shape index: {}]   ;;  %s820_s3 = inlined_call_operand.vmem [shape: f32[2,3,256], index: 3, kind: output, shape index: {}]  }
   0x1   :  { %10 = vsyncpa [#allocation3 + $0x1], 0  ;;  %s668_s12 = smov 0   ;;  %s670_s13 = smov 0  }
   0x2   :  { %s672_s14 = smov 0   ;;  %s674_s15 = smov 0  }
   0x3   :  { %s676_s16 = smov 0   ;;  %s678_s17 = smov 0  }
   0x4 LB: > { %s475_s18 = sadd.s32 4294967295, %s640_s17   ;;  %s28_s19 = sadd.s32 1, %s636_s16  ;;  %s640_s17 = sphi %s678_s17, %s16_s17   ;;  %s636_s16 = sphi %s676_s16, %s828_s16   ;;  %s632_s15 = sphi %s674_s15, %s827_s15   ;;  %s628_s14 = sphi %s672_s14, %s826_s14   ;;  %s624_s13 = sphi %s670_s13, %s825_s13   ;;  %s620_s12 = sphi %s668_s12, %s824_s12  }
   0x5   : > { %p30_p0 = scmp.ge.s32.totalorder %s28_s19, 2  ;;  %s37_s20 = sadd.s32 1, %s628_s14 }
   0x6   : > { %p44_p1 = scmp.ne.s32.totalorder %s628_s14, %s624_s13  ;;  %p45_p2 = scmp.eq.s32.totalorder %s640_s17, 0 }
   0x7   : > { %s830_s19 = smov (%p30_p0, %s28_s19), 0  ;;  %p50_p4 = scmp.ne.s32.totalorder %s624_s13, %s620_s12 }
   0x8   : > { %p704_p3 = por %p45_p2, %p44_p1  ;;  %s32_s22 = ssub.s32 %s636_s16, %s830_s19 }
   0x9   : > { %p51_p5 = scmp.eq.s32.totalorder %s475_s18, 0  ;;  %p35_p6 = scmp.eq.s32.totalorder %s32_s22, 0 }
   0xa   : > { %p496_p8 = scmp.lt.s32.totalorder %s640_s17, 2  ;;  %s150_s25 = sand.u32 1, %s628_s14  }
   0xb   : > { %p711_p7 = por %p51_p5, %p50_p4  ;;  %s488_s26 = sshll.u32 %s636_s16, 10 }
   0xc   : > { %s717_s24 = scalar_select %p35_p6, %s628_s14, %s37_s20  }
   0xd   : > { %s479_s27 = sshll.u32 %s150_s25, 6  ;;  %s724_s30 = scalar_lea.hbm %s817_s0, %s488_s26 }
   0xe   : > { %s154_s4 = scalar_lea.vmem [#allocation2], %s479_s27  ;;  %p728_p9 = pnand %p496_p8, %p704_p3 }
   0xf   : > { %s163_s5 = sshll.u32 %s154_s4, 4  ;;  %s734_s7 = scalar_lea.sflag [#allocation3], %s150_s25  ;;  %s732_s5 = int_to_ptr.vmem [resolvable:$true] %s163_s5 }
  0x10   : > { %s560_s8 = scalar_lea.hbm %s724_s30, 1024  ;;  %p562_p11 = pneg %p728_p9 }
  0x11   : > { %p561_p10 = scmp.ne.s32.totalorder %s724_s30, %s560_s8  ;;  %s565_s11 = scalar_lea.hbm %s817_s0, 2048 }
  0x12   : > { %p566_p0 = scmp.lt.u32.totalorder %s724_s30, %s817_s0  ;;  %p567_p1 = scmp.lt.u32.totalorder %s565_s11, %s560_s8 }
  0x13   : > { %p563_p12 = pnand %p562_p11, %p561_p10  ;;  %p569_p3 = scmp.lt.u32.totalorder %s560_s8, %s724_s30 }
  0x14   : > { %p568_p2 = por %p567_p1, %p566_p0 }
  0x15   : > { %p564_p13 = pneg %p563_p12 }
  0x16   : > { %p570_p4 = por %p569_p3, %p568_p2 }
  0x18   : > { %p571_p5 = pnand %p570_p4, %p564_p13 }
  0x1a   : > { %574 = shalt.err (!%p571_p5)
}
  0x1b   : > { %s575_s20 = scalar_lea.vmem %s732_s5, 1024  ;;  %s642_s21 = smov [#allocation2]  }
  0x1c   : > { %p576_p6 = scmp.ne.s32.totalorder %s732_s5, %s575_s20  ;;  %s580_s22 = sshll.u32 %s642_s21, 4  ;;  %s581_s22 = int_to_ptr.vmem [resolvable:$false] %s580_s22 }
  0x1d   : > { %s582_s25 = scalar_lea.vmem %s581_s22, 2048  ;;  %p583_p12 = scmp.lt.s32.totalorder %s732_s5, %s581_s22 }
  0x1e   : > { %p578_p8 = pnand %p576_p6, %p562_p11  ;;  %p584_p0 = scmp.lt.s32.totalorder %s582_s25, %s575_s20 }
  0x20   : > { %p579_p10 = pneg %p578_p8  ;;  %p585_p1 = por %p584_p0, %p583_p12 }
  0x22   : > { %p586_p2 = pnand %p585_p1, %p579_p10 }
  0x24   : > { %589 = shalt.err (!%p586_p2)
}
  0x25   : > { %s643_s26 = smov 256   ;;  %s644_s27 = smov 16  }
  0x26   : > { %495 = dma.hbm_to_vmem [thread:$0]  (!%p728_p9), %s724_s30, 1024, %s732_s5, %s734_s7, %s643_s26, %s643_s26, %s644_s27  }
  0x27   : > { %p482_p11 = scmp.ge.s32.totalorder %s640_s17, 1  ;;  %p171_p13 = scmp.lt.s32.totalorder %s640_s17, 3 }
  0x29   : > { %p172_p3 = pnand %p482_p11, %p171_p13 }
  0x2a   : > { %s177_s28 = sand.u32 (!%p172_p3), 1, %s624_s13  }
  0x2b   : > { %175 = sbr.rel (%p172_p3) target bundleno = 232 (0xe8), region = 32  ;;  %s483_s29 = sshll.u32 (!%p172_p3), %s177_s28, 6 }
  0x2c   : > { %s178_s4 = scalar_lea.sflag (!%p172_p3), [#allocation3], %s177_s28  ;;  %s765_s8 = scalar_lea.vmem (!%p172_p3), [#allocation2], %s483_s29 }
  0x32   : > { %615 = dma.done.wait (%p711_p7), %s178_s4, 1024  }
  0x33   : > { %617 = vsyncadd (%p711_p7), %s178_s4, 4294966272  ;;  %v645_v0 = vmov 1   ;;  %v646_v1 = vmov 0   ;;  %v227_v2 = vld [vmem:[%s818_s1] sm:$0xff]  ;;  %v228_v3 = vld [vmem:[%s818_s1 + $0x8] sm:$0xff]  ;;  %v647_v4 = vmov 2  }
  0x34   : > { %551 = vset.pattern.permute.xlu1 %v645_v0  ;;  %550 = vset.pattern.permute.xlu0 %v646_v1  ;;  %v229_v5 = vld [vmem:[%s818_s1 + $0x10] sm:$0xff]  ;;  %v230_v6 = vld [vmem:[%s818_s1 + $0x18] sm:$0xff]  ;;  %v367_v7 = vld [vmem:[%s819_s2] sm:$0x7]  ;;  %p210_p7 = scmp.lt.s32.totalorder %s632_s15, 1  ;;  %vm361_vm0 = vcmask 1040384  }
  0x35   : > { %278 = vperm.xlu1 %551, %v227_v2   ;;  %233 = vperm.xlu0 %550, %v227_v2   ;;  %v221_v14 = vld [vmem:[%s765_s8 + $0x10] sm:$0xff]  ;;  %v222_v15 = vld [vmem:[%s765_s8 + $0x18] sm:$0xff]  ;;  %v219_v16 = vld [vmem:[%s765_s8] sm:$0xff]  ;;  %vm364_vm1 = vcmask 1041408  }
  0x36   : > { %v220_v17 = vld [vmem:[%s765_s8 + $0x8] sm:$0xff]  ;;  %v223_v18 = vld [vmem:[%s765_s8 + $0x20] sm:$0xff]  ;;  %v225_v28 = vld [vmem:[%s765_s8 + $0x30] sm:$0xff]  ;;  %s832_s15 = smov (!%p210_p7, %s632_s15), 1 }
  0x37   : > { %v224_v19 = vld [vmem:[%s765_s8 + $0x28] sm:$0xff]  ;;  %v226_v29 = vld [vmem:[%s765_s8 + $0x38] sm:$0xff]  ;;  %s489_s20 = sshll.u32 %s832_s15, 3 }
  0x38   : > { %s217_s25 = scalar_lea.vmem %s820_s3, %s489_s20 }
  0x39   : > { %282 = vperm.xlu1 %551, %v228_v3   ;;  %238 = vperm.xlu0 %550, %v228_v3  }
  0x3d   : > { %553 = vset.pattern.permute.xlu1 %v647_v4  ;;  %552 = vset.pattern.permute.xlu0 %v647_v4 }
  0x3e   : > { %324 = vperm.xlu1 %553, %v228_v3   ;;  %320 = vperm.xlu0 %552, %v227_v2  }
  0x42   : > { %554 = vset.pattern.permute.xlu1 %v646_v1  ;;  %555 = vset.pattern.permute.xlu0 %v645_v0 }
  0x43   : > { %243 = vperm.xlu1 %554, %v229_v5   ;;  %286 = vperm.xlu0 %555, %v229_v5  }
  0x47   : > { %556 = vset.pattern.permute.xlu1 %v647_v4  ;;  %290 = vperm.xlu0 %555, %v230_v6  }
  0x48   : > { %328 = vperm.xlu1 %556, %v229_v5  }
  0x4b   : > { %559 = vset.pattern.permute.xlu0 %v646_v1 }
  0x4c   : > { %557 = vset.pattern.permute.xlu1 %v646_v1  ;;  %370 = vperm.xlu0 %559, %v367_v7  }
  0x4d   : > { %248 = vperm.xlu1 %557, %v230_v6  }
  0x51   : > { %558 = vset.pattern.permute.xlu1 %v647_v4 }
  0x52   : > { %332 = vperm.xlu1 %558, %v230_v6  }
  0xb4   : > { %v279_v8 = vpop.permute.xlu1 %278  ;;  %v234_v9 = vpop.permute.xlu0 %233 }
  0xb5   : > { %v293_v24 = vmul.f32 %v279_v8, %v219_v16  ;;  %v294_v25 = vmul.f32 %v279_v8, %v220_v17  ;;  %v251_v32 = vmul.f32 %v234_v9, %v219_v16  ;;  %v252_v33 = vmul.f32 %v234_v9, %v220_v17 }
  0xb8   : > { %v283_v10 = vpop.permute.xlu1 %282  ;;  %v239_v11 = vpop.permute.xlu0 %238 }
  0xb9   : > { %v295_v20 = vmul.f32 %v283_v10, %v221_v14  ;;  %v296_v21 = vmul.f32 %v283_v10, %v222_v15  ;;  %v253_v34 = vmul.f32 %v239_v11, %v221_v14  ;;  %v254_v35 = vmul.f32 %v239_v11, %v222_v15 }
  0xbb   : > { %v301_v30 = vadd.f32 %v295_v20, %v293_v24  ;;  %v310_v31 = vadd.f32 %v296_v21, %v294_v25  ;;  %v259_v46 = vadd.f32 %v253_v34, %v251_v32  ;;  %v268_v47 = vadd.f32 %v254_v35, %v252_v33 }
  0xbd   : > { %v325_v12 = vpop.permute.xlu1 %324  ;;  %v321_v13 = vpop.permute.xlu0 %320 }
  0xbe   : > { %v337_v50 = vmul.f32 %v325_v12, %v221_v14  ;;  %v338_v51 = vmul.f32 %v325_v12, %v222_v15  ;;  %v335_v52 = vmul.f32 %v321_v13, %v219_v16  ;;  %v336_v53 = vmul.f32 %v321_v13, %v220_v17 }
  0xc0   : > { %v343_v1 = vadd.f32 %v337_v50, %v335_v52  ;;  %v352_v2 = vadd.f32 %v338_v51, %v336_v53 }
  0xc2   : > { %v244_v22 = vpop.permute.xlu1 %243  ;;  %v287_v23 = vpop.permute.xlu0 %286 }
  0xc3   : > { %v297_v26 = vmul.f32 %v287_v23, %v223_v18  ;;  %v298_v27 = vmul.f32 %v287_v23, %v224_v19  ;;  %v255_v42 = vmul.f32 %v244_v22, %v223_v18  ;;  %v256_v43 = vmul.f32 %v244_v22, %v224_v19 }
  0xc5   : > { %v302_v37 = vadd.f32 %v301_v30, %v297_v26  ;;  %v311_v38 = vadd.f32 %v310_v31, %v298_v27  ;;  %v260_v55 = vadd.f32 %v259_v46, %v255_v42  ;;  %v269_v56 = vadd.f32 %v268_v47, %v256_v43 }
  0xc6   : > { %v291_v36 = vpop.permute.xlu0 %290 }
  0xc7   : > { %v299_v39 = vmul.f32 %v291_v36, %v225_v28  ;;  %v300_v40 = vmul.f32 %v291_v36, %v226_v29  ;;  %v329_v41 = vpop.permute.xlu1 %328 }
  0xc8   : > { %v339_v59 = vmul.f32 %v329_v41, %v223_v18  ;;  %v340_v60 = vmul.f32 %v329_v41, %v224_v19 }
  0xc9   : > { %v303_v44 = vadd.f32 %v302_v37, %v299_v39  ;;  %v312_v45 = vadd.f32 %v311_v38, %v300_v40 }
  0xca   : > { %v344_v6 = vadd.f32 %v343_v1, %v339_v59  ;;  %v353_v7 = vadd.f32 %v352_v2, %v340_v60 }
  0xcb   : > { %v304_v48 = vrot.slane %v303_v44, 4  ;;  %v313_v49 = vrot.slane %v312_v45, 4  ;;  %v371_v40 = vpop.permute.xlu0 %370 }
  0xcc   : > { %v249_v54 = vpop.permute.xlu1 %248 }
  0xcd   : > { %v257_v57 = vmul.f32 %v249_v54, %v225_v28  ;;  %v258_v58 = vmul.f32 %v249_v54, %v226_v29  ;;  %v305_v61 = vadd.f32 %v304_v48, %v303_v44  ;;  %v314_v62 = vadd.f32 %v313_v49, %v312_v45 }
  0xcf   : > { %v261_v63 = vadd.f32 %v260_v55, %v257_v57  ;;  %v270_v0 = vadd.f32 %v269_v56, %v258_v58  ;;  %v306_v10 = vrot.slane %v305_v61, 2  ;;  %v315_v11 = vrot.slane %v314_v62, 2 }
  0xd1   : > { %v262_v3 = vrot.slane %v261_v63, 4  ;;  %v271_v4 = vrot.slane %v270_v0, 4  ;;  %v333_v5 = vpop.permute.xlu1 %332  ;;  %v307_v20 = vadd.f32 %v306_v10, %v305_v61  ;;  %v316_v21 = vadd.f32 %v315_v11, %v314_v62 }
  0xd2   : > { %v341_v8 = vmul.f32 %v333_v5, %v225_v28  ;;  %v342_v9 = vmul.f32 %v333_v5, %v226_v29 }
  0xd3   : > { %v263_v12 = vadd.f32 %v262_v3, %v261_v63  ;;  %v272_v13 = vadd.f32 %v271_v4, %v270_v0  ;;  %v308_v30 = vrot.slane %v307_v20, 1  ;;  %v317_v31 = vrot.slane %v316_v21, 1 }
  0xd4   : > { %v345_v14 = vadd.f32 %v344_v6, %v341_v8  ;;  %v354_v15 = vadd.f32 %v353_v7, %v342_v9 }
  0xd5   : > { %v264_v16 = vrot.slane %v263_v12, 2  ;;  %v273_v17 = vrot.slane %v272_v13, 2  ;;  %v309_v38 = vadd.f32 %v308_v30, %v307_v20  ;;  %v318_v39 = vadd.f32 %v317_v31, %v316_v21 }
  0xd6   : > { %v346_v18 = vrot.slane %v345_v14, 4  ;;  %v355_v19 = vrot.slane %v354_v15, 4 }
  0xd7   : > { %v265_v22 = vadd.f32 %v264_v16, %v263_v12  ;;  %v274_v23 = vadd.f32 %v273_v17, %v272_v13 }
  0xd8   : > { %v347_v24 = vadd.f32 %v346_v18, %v345_v14  ;;  %v356_v25 = vadd.f32 %v355_v19, %v354_v15 }
  0xd9   : > { %v266_v26 = vrot.slane %v265_v22, 1  ;;  %v275_v27 = vrot.slane %v274_v23, 1 }
  0xda   : > { %v348_v28 = vrot.slane %v347_v24, 2  ;;  %v357_v29 = vrot.slane %v356_v25, 2 }
  0xdb   : > { %v267_v34 = vadd.f32 %v266_v26, %v265_v22  ;;  %v276_v35 = vadd.f32 %v275_v27, %v274_v23 }
  0xdc   : > { %v349_v32 = vadd.f32 %v348_v28, %v347_v24  ;;  %v358_v33 = vadd.f32 %v357_v29, %v356_v25 }
  0xdd   : > { %v362_v43 = vsel %vm361_vm0, %v267_v34, %v309_v38  ;;  %v363_v44 = vsel %vm361_vm0, %v276_v35, %v318_v39 }
  0xde   : > { %v350_v36 = vrot.slane %v349_v32, 1  ;;  %v359_v37 = vrot.slane %v358_v33, 1 }
  0xe0   : > { %v351_v41 = vadd.f32 %v350_v36, %v349_v32  ;;  %v360_v42 = vadd.f32 %v359_v37, %v358_v33 }
  0xe2   : > { %v365_v45 = vsel %vm364_vm1, %v362_v43, %v351_v41  ;;  %v366_v46 = vsel %vm364_vm1, %v363_v44, %v360_v42 }
  0xe3   : > { %v373_v47 = vadd.f32 %v371_v40, %v365_v45  ;;  %v374_v48 = vadd.f32 %v371_v40, %v366_v46 }
  0xe5   : > { %v377_v49 = vcombine.low %v373_v47, %v374_v48 }
  0xe7   : > { %379 = vst [vmem:[%s217_s25] sm:$0x77] %v377_v49 }
  0xe8 PF: > { %s16_s17 = sadd.s32 1, %s640_s17   ;;  %s824_s12 = smov %s624_s13 }
  0xe9   : > { %p13_p9 = scmp.ge.s32.totalorder %s16_s17, 4   ;;  %s825_s13 = smov %s628_s14 }
  0xea   : > { %s826_s14 = smov %s717_s24  ;;  %s827_s15 = smov %s636_s16 }
  0xeb   : > { %s828_s16 = smov %s830_s19  ;;  %15 = sbr.rel (!%p13_p9) target bundleno = 4 (0x4), region = 72 }
  0xf2   :  { %410 = vsyncpa [#allocation3], 1 }
  0xf3   :  { %412 = vsyncpa [#allocation3 + $0x1], 1 }

</bundles_post_ra>
